<compile_context>
chip_gen: v6e
topology: v6e:2x2x1
jax: 0.10.0
libtpu: 0.0.40
codegen_flags: <defaults>
</compile_context>

<pallas_src>
import jax
import jax.numpy as jnp
from jax import lax
from jax.experimental import pallas as pl
from jax.experimental.pallas import tpu as pltpu

SMOOTH = 1e-06


def _clip_epilogue(img_emb, txt_emb, temp_ref, loss_ref):
    """img_emb / txt_emb: [B, EP] f32 (zero-padded embed cols). Writes scalar loss."""
    B = img_emb.shape[0]

    # norm(x) = x / (||x||_2(dim=1) + smooth); exact reciprocal (off crit path).
    img_inv = pl.reciprocal(
        jnp.sqrt(jnp.sum(img_emb * img_emb, axis=1, keepdims=True)) + SMOOTH)
    txt_inv = pl.reciprocal(
        jnp.sqrt(jnp.sum(txt_emb * txt_emb, axis=1, keepdims=True)) + SMOOTH)
    img_n = img_emb * img_inv
    txt_n = txt_emb * txt_inv

    # scale = exp(temperature); splat the SMEM scalar to a vector for the EUP exp.
    scale = jnp.exp(jnp.full((B, 1), temp_ref[0, 0], dtype=jnp.float32))

    # Diagonal of the logits computed directly (no BxB eye mask / iota).
    diag = jnp.sum(img_n * txt_n, axis=1, keepdims=True) * scale            # [B, 1]

    # Both cross-entropies as row-wise LSE over NT matmuls (no in-kernel
    # transpose); bf16 operands, f32 accumulation on the MXU.
    img_b = img_n.astype(jnp.bfloat16)
    txt_b = txt_n.astype(jnp.bfloat16)
    nt = (((1,), (1,)), ((), ()))
    logits_i = lax.dot_general(img_b, txt_b, nt,
                               preferred_element_type=jnp.float32) * scale  # [B, B]
    logits_t = lax.dot_general(txt_b, img_b, nt,
                               preferred_element_type=jnp.float32) * scale  # [B, B]

    m_i = jnp.max(logits_i, axis=1, keepdims=True)
    lse_i = jnp.log(jnp.sum(jnp.exp(logits_i - m_i), axis=1, keepdims=True)) + m_i
    m_t = jnp.max(logits_t, axis=1, keepdims=True)
    lse_t = jnp.log(jnp.sum(jnp.exp(logits_t - m_t), axis=1, keepdims=True)) + m_t

    loss_i = jnp.mean(lse_i - diag)
    loss_t = jnp.mean(lse_t - diag)
    loss_ref[0, 0] = 0.5 * (loss_i + loss_t)


def clip_loss_single_kernel(img_ref, wimg_ref, bimg_ref,
                            txt_ref, wtxt_ref, btxt_ref,
                            temp_ref, loss_ref):
    """Whole problem resident in VMEM: one fused step, no grid / accumulator."""
    img_emb = jnp.dot(img_ref[...], wimg_ref[...],
                      preferred_element_type=jnp.float32) + bimg_ref[...]
    txt_emb = jnp.dot(txt_ref[...], wtxt_ref[...],
                      preferred_element_type=jnp.float32) + btxt_ref[...]
    _clip_epilogue(img_emb, txt_emb, temp_ref, loss_ref)


def clip_loss_ktiled_kernel(img_ref, wimg_ref, bimg_ref,
                            txt_ref, wtxt_ref, btxt_ref,
                            temp_ref, loss_ref, img_acc):
    """Fallback for large K: image matmul K-tiled with f32 VMEM accumulator."""
    k = pl.program_id(0)

    @pl.when(k == 0)
    def _():
        img_acc[...] = jnp.zeros_like(img_acc)

    img_acc[...] += jnp.dot(img_ref[...], wimg_ref[...],
                            preferred_element_type=jnp.float32)

    @pl.when(k == pl.num_programs(0) - 1)
    def _():
        img_emb = img_acc[...] + bimg_ref[...]
        txt_emb = jnp.dot(txt_ref[...], wtxt_ref[...],
                          preferred_element_type=jnp.float32) + btxt_ref[...]
        _clip_epilogue(img_emb, txt_emb, temp_ref, loss_ref)


def _plan_k_tile(B, KI, KT, EP, vmem_budget_bytes=32 << 20):
    """None -> single-step (whole K resident); else a K tile size.

    K-tiling is only enabled when the working set threatens the scoped VMEM
    budget; otherwise the extra grid steps are pure overhead.
    TODO(synk): derive budget per generation (v7x: 64 MiB physical VMEM).
    """
    def ws_bytes(tk, buffered):
        img_blk = 2 * (B * tk + tk * EP) * (2 if buffered else 1)   # bf16 blocks
        txt_blk = 2 * (B * KT + KT * EP)                            # resident bf16
        acc = 4 * B * EP                                            # f32 accumulator
        epilogue = 4 * (2 * B * B + 6 * B * EP)                     # f32 temporaries
        return img_blk + txt_blk + acc + epilogue

    if ws_bytes(KI, buffered=False) <= vmem_budget_bytes:
        return None
    for tk in (2048, 1024, 512, 256, 128):
        if KI >= tk and KI % tk == 0 and ws_bytes(tk, buffered=True) <= vmem_budget_bytes:
            return tk
    return None  # nothing divides cleanly: keep whole K and let VMEM limit decide


def clip_forward(img_flat, txt_flat, params, compute_dtype=jnp.bfloat16):
    """img_flat: [B, Ci] f32, txt_flat: [B, Ct] f32 -> scalar contrastive loss."""
    wie, bie, wte, bte, wip, bip, wtp, btp, temp = params

    # Glue: fuse the stand-in encoder Linear with its projection Linear (f32).
    # TODO(synk): real encoders from get_cls_from_pkg(...) cannot be fused like this.
    w_img = jnp.dot(wie, wip)                    # [Ci, E] f32
    b_img = jnp.dot(bie, wip) + bip              # [1, E]  f32
    w_txt = jnp.dot(wte, wtp)                    # [Ct, E] f32
    b_txt = jnp.dot(bte, wtp) + btp              # [1, E]  f32

    # Pad embed dim to a lane-dense multiple of 128 (zero cols are inert for
    # norms, diag, and logits), then cast matmul operands to bf16 (f32 acc).
    E = w_img.shape[1]
    EP = max(128, ((E + 127) // 128) * 128)
    pe = EP - E
    if pe:
        w_img = jnp.pad(w_img, ((0, 0), (0, pe)))
        b_img = jnp.pad(b_img, ((0, 0), (0, pe)))
        w_txt = jnp.pad(w_txt, ((0, 0), (0, pe)))
        b_txt = jnp.pad(b_txt, ((0, 0), (0, pe)))

    w_img = w_img.astype(compute_dtype)
    w_txt = w_txt.astype(compute_dtype)
    b_img = b_img.astype(jnp.float32)
    b_txt = b_txt.astype(jnp.float32)
    img = img_flat.astype(compute_dtype)
    txt = txt_flat.astype(compute_dtype)

    B, KI = img.shape
    _, KT = txt.shape

    cost = pl.CostEstimate(
        flops=2 * B * EP * (KI + KT) + 4 * B * B * EP,
        transcendentals=2 * B * B + 6 * B,
        bytes_accessed=2 * (img.size + txt.size + w_img.size + w_txt.size)
                       + 4 * (b_img.size + b_txt.size + 2))

    tk = _plan_k_tile(B, KI, KT, EP)

    if tk is None:
        loss = pl.pallas_call(
            clip_loss_single_kernel,
            out_shape=jax.ShapeDtypeStruct((1, 1), jnp.float32),
            in_specs=[
                pl.BlockSpec(memory_space=pltpu.MemorySpace.VMEM),   # image feats
                pl.BlockSpec(memory_space=pltpu.MemorySpace.VMEM),   # fused image weight
                pl.BlockSpec(memory_space=pltpu.MemorySpace.VMEM),   # fused image bias
                pl.BlockSpec(memory_space=pltpu.MemorySpace.VMEM),   # text feats
                pl.BlockSpec(memory_space=pltpu.MemorySpace.VMEM),   # fused text weight
                pl.BlockSpec(memory_space=pltpu.MemorySpace.VMEM),   # fused text bias
                pl.BlockSpec(memory_space=pltpu.MemorySpace.SMEM),   # temperature
            ],
            out_specs=pl.BlockSpec(memory_space=pltpu.MemorySpace.SMEM),
            cost_estimate=cost,
        )(img, w_img, b_img, txt, w_txt, b_txt, temp)
    else:
        # TODO(synk): add a leading "parallel" batch axis for v7x megacore.
        nk = KI // tk
        loss = pl.pallas_call(
            clip_loss_ktiled_kernel,
            out_shape=jax.ShapeDtypeStruct((1, 1), jnp.float32),
            grid=(nk,),
            in_specs=[
                pl.BlockSpec((B, tk), lambda k: (0, k)),             # image feats (K-tiled)
                pl.BlockSpec((tk, EP), lambda k: (k, 0)),            # fused image weight
                pl.BlockSpec((1, EP), lambda k: (0, 0)),             # fused image bias
                pl.BlockSpec((B, KT), lambda k: (0, 0)),             # text feats (resident)
                pl.BlockSpec((KT, EP), lambda k: (0, 0)),            # fused text weight
                pl.BlockSpec((1, EP), lambda k: (0, 0)),             # fused text bias
                pl.BlockSpec(memory_space=pltpu.MemorySpace.SMEM),   # temperature
            ],
            out_specs=pl.BlockSpec(memory_space=pltpu.MemorySpace.SMEM),
            scratch_shapes=[pltpu.VMEM((B, EP), jnp.float32)],
            compiler_params=pltpu.CompilerParams(
                dimension_semantics=("arbitrary",)),
            cost_estimate=cost,
        )(img, w_img, b_img, txt, w_txt, b_txt, temp)

    return loss[0, 0]


def clip_forward_ref(img_flat, txt_flat, params, compute_dtype=jnp.float32):
    """Pure-JAX reference mirroring the PyTorch forward (optionally mixed precision)."""
    wie, bie, wte, bte, wip, bip, wtp, btp, temp = params
    w_img = jnp.dot(wie, wip).astype(compute_dtype)
    b_img = jnp.dot(bie, wip) + bip
    w_txt = jnp.dot(wte, wtp).astype(compute_dtype)
    b_txt = jnp.dot(bte, wtp) + btp
    ie = jnp.dot(img_flat.astype(compute_dtype), w_img,
                 preferred_element_type=jnp.float32) + b_img
    te = jnp.dot(txt_flat.astype(compute_dtype), w_txt,
                 preferred_element_type=jnp.float32) + b_txt
    ie = ie / (jnp.linalg.norm(ie, axis=1, keepdims=True) + SMOOTH)
    te = te / (jnp.linalg.norm(te, axis=1, keepdims=True) + SMOOTH)
    logits = jnp.dot(ie.astype(compute_dtype), te.astype(compute_dtype).T,
                     preferred_element_type=jnp.float32) * jnp.exp(temp[0, 0])
    tgt = jnp.arange(logits.shape[0])
    loss_i = -jnp.mean(jax.nn.log_softmax(logits, axis=1)[tgt, tgt])
    loss_t = -jnp.mean(jax.nn.log_softmax(logits.T, axis=1)[tgt, tgt])
    return 0.5 * (loss_i + loss_t)


if __name__ == "__main__":
    # Small shapes consistent with the forward pass.
    B, C, H, W = 8, 4, 16, 16          # image: NCHW
    T, Dt = 8, 16                      # text:  [B, T, Dt]
    CTX_IMG, CTX_TXT = 128, 128        # encoder context dims
    EMBED = 64                         # embed_dim

    key = jax.random.PRNGKey(0)
    ks = jax.random.split(key, 10)

    i_nchw = jax.random.normal(ks[0], (B, C, H, W), jnp.float32)
    t_btd = jax.random.normal(ks[1], (B, T, Dt), jnp.float32)

    Ci = C * H * W
    Ct = T * Dt
    # Deterministic parameter init (synthetic, not a checkpoint).
    wie = jax.random.normal(ks[2], (Ci, CTX_IMG), jnp.float32) * (1.0 / jnp.sqrt(Ci))
    bie = jax.random.normal(ks[3], (1, CTX_IMG), jnp.float32) * 0.01
    wte = jax.random.normal(ks[4], (Ct, CTX_TXT), jnp.float32) * (1.0 / jnp.sqrt(Ct))
    bte = jax.random.normal(ks[5], (1, CTX_TXT), jnp.float32) * 0.01
    wip = jax.random.normal(ks[6], (CTX_IMG, EMBED), jnp.float32) * (1.0 / jnp.sqrt(CTX_IMG))
    bip = jax.random.normal(ks[7], (1, EMBED), jnp.float32) * 0.01
    wtp = jax.random.normal(ks[8], (CTX_TXT, EMBED), jnp.float32) * (1.0 / jnp.sqrt(CTX_TXT))
    btp = jax.random.normal(ks[9], (1, EMBED), jnp.float32) * 0.01
    temp = jnp.ones((1, 1), jnp.float32)   # nn.Parameter(torch.tensor((1.0,)))

    params = (wie, bie, wte, bte, wip, bip, wtp, btp, temp)

    # Glue: flatten inputs (view(b, -1) equivalent).
    img_flat = i_nchw.reshape(B, -1)
    txt_flat = t_btd.reshape(B, -1)

    loss = jax.jit(clip_forward)(img_flat, txt_flat, params)
    jax.block_until_ready(loss)

    # Tight check vs a precision-matched (bf16 matmul / f32 epilogue) reference.
    ref_mixed = clip_forward_ref(img_flat, txt_flat, params, compute_dtype=jnp.bfloat16)
    assert jnp.allclose(loss, ref_mixed, rtol=1e-2, atol=1e-2), (loss, ref_mixed)

    # Loose check vs the full-f32 PyTorch-semantics reference (bf16 drift bound).
    ref_f32 = clip_forward_ref(img_flat, txt_flat, params, compute_dtype=jnp.float32)
    assert jnp.allclose(loss, ref_f32, rtol=5e-2, atol=5e-2), (loss, ref_f32)

    print("KERNEL_OK")
</pallas_src>

<mosaic_0001>
module attributes {stable_mosaic.version = 11 : i64} {
  func.func @clip_loss_single_kernel(%arg0: memref<8x1024xbf16, #tpu.memory_space<vmem>>, %arg1: memref<1024x128xbf16, #tpu.memory_space<vmem>>, %arg2: memref<1x128xf32, #tpu.memory_space<vmem>>, %arg3: memref<8x128xbf16, #tpu.memory_space<vmem>>, %arg4: memref<128x128xbf16, #tpu.memory_space<vmem>>, %arg5: memref<1x128xf32, #tpu.memory_space<vmem>>, %arg6: memref<1x1xf32, #tpu.memory_space<smem>>, %arg7: memref<1x1xf32, #tpu.memory_space<smem>>) attributes {dimension_semantics = [], scalar_prefetch = 0 : i64, scratch_operands = 0 : i64, tpu.core_type = #tpu.core_type<tc>} {
    %c0 = arith.constant 0 : index
    %c0_0 = arith.constant 0 : index
    %0 = vector.load %arg0[%c0, %c0_0] : memref<8x1024xbf16, #tpu.memory_space<vmem>>, vector<8x1024xbf16>
    %c0_1 = arith.constant 0 : index
    %c0_2 = arith.constant 0 : index
    %1 = vector.load %arg1[%c0_1, %c0_2] : memref<1024x128xbf16, #tpu.memory_space<vmem>>, vector<1024x128xbf16>
    %cst = arith.constant dense<0.000000e+00> : vector<8x128xf32>
    %2 = tpu.matmul %0, %1, %cst {dimension_numbers = #tpu.dot_dimension_numbers<[1], [0], [0], [1], [0, 0, 1, 1], [], []>} : vector<8x1024xbf16>, vector<1024x128xbf16>, vector<8x128xf32> -> vector<8x128xf32>
    %c0_3 = arith.constant 0 : index
    %c0_4 = arith.constant 0 : index
    %3 = vector.load %arg2[%c0_3, %c0_4] : memref<1x128xf32, #tpu.memory_space<vmem>>, vector<1x128xf32>
    %4 = vector.broadcast %3 : vector<1x128xf32> to vector<8x128xf32>
    %5 = arith.addf %2, %4 : vector<8x128xf32>
    %c0_5 = arith.constant 0 : index
    %c0_6 = arith.constant 0 : index
    %6 = vector.load %arg3[%c0_5, %c0_6] : memref<8x128xbf16, #tpu.memory_space<vmem>>, vector<8x128xbf16>
    %c0_7 = arith.constant 0 : index
    %c0_8 = arith.constant 0 : index
    %7 = vector.load %arg4[%c0_7, %c0_8] : memref<128x128xbf16, #tpu.memory_space<vmem>>, vector<128x128xbf16>
    %cst_9 = arith.constant dense<0.000000e+00> : vector<8x128xf32>
    %8 = tpu.matmul %6, %7, %cst_9 {dimension_numbers = #tpu.dot_dimension_numbers<[1], [0], [0], [1], [0, 0, 1, 1], [], []>} : vector<8x128xbf16>, vector<128x128xbf16>, vector<8x128xf32> -> vector<8x128xf32>
    %c0_10 = arith.constant 0 : index
    %c0_11 = arith.constant 0 : index
    %9 = vector.load %arg5[%c0_10, %c0_11] : memref<1x128xf32, #tpu.memory_space<vmem>>, vector<1x128xf32>
    %10 = vector.broadcast %9 : vector<1x128xf32> to vector<8x128xf32>
    %11 = arith.addf %8, %10 : vector<8x128xf32>
    %12 = arith.mulf %5, %5 : vector<8x128xf32>
    %cst_12 = arith.constant dense<0.000000e+00> : vector<8xf32>
    %13 = vector.multi_reduction <add>, %12, %cst_12 [1] : vector<8x128xf32> to vector<8xf32>
    %14 = vector.shape_cast %13 : vector<8xf32> to vector<8x1xf32>
    %15 = math.sqrt %14 : vector<8x1xf32>
    %cst_13 = arith.constant 9.99999997E-7 : f32
    %16 = vector.broadcast %cst_13 : f32 to vector<8x1xf32>
    %17 = arith.addf %15, %16 : vector<8x1xf32>
    %18 = tpu.reciprocal %17 : vector<8x1xf32> -> vector<8x1xf32>
    %19 = arith.mulf %11, %11 : vector<8x128xf32>
    %cst_14 = arith.constant dense<0.000000e+00> : vector<8xf32>
    %20 = vector.multi_reduction <add>, %19, %cst_14 [1] : vector<8x128xf32> to vector<8xf32>
    %21 = vector.shape_cast %20 : vector<8xf32> to vector<8x1xf32>
    %22 = math.sqrt %21 : vector<8x1xf32>
    %cst_15 = arith.constant 9.99999997E-7 : f32
    %23 = vector.broadcast %cst_15 : f32 to vector<8x1xf32>
    %24 = arith.addf %22, %23 : vector<8x1xf32>
    %25 = tpu.reciprocal %24 : vector<8x1xf32> -> vector<8x1xf32>
    %26 = vector.broadcast %18 : vector<8x1xf32> to vector<8x128xf32>
    %27 = arith.mulf %5, %26 : vector<8x128xf32>
    %28 = vector.broadcast %25 : vector<8x1xf32> to vector<8x128xf32>
    %29 = arith.mulf %11, %28 : vector<8x128xf32>
    %c0_16 = arith.constant 0 : index
    %c0_17 = arith.constant 0 : index
    %30 = memref.load %arg6[%c0_16, %c0_17] : memref<1x1xf32, #tpu.memory_space<smem>>
    %31 = vector.broadcast %30 : f32 to vector<8x1xf32>
    %32 = math.exp %31 : vector<8x1xf32>
    %33 = arith.mulf %27, %29 : vector<8x128xf32>
    %cst_18 = arith.constant dense<0.000000e+00> : vector<8xf32>
    %34 = vector.multi_reduction <add>, %33, %cst_18 [1] : vector<8x128xf32> to vector<8xf32>
    %35 = vector.shape_cast %34 : vector<8xf32> to vector<8x1xf32>
    %36 = arith.mulf %35, %32 : vector<8x1xf32>
    %37 = arith.truncf %27 : vector<8x128xf32> to vector<8x128xbf16>
    %38 = arith.truncf %29 : vector<8x128xf32> to vector<8x128xbf16>
    %cst_19 = arith.constant dense<0.000000e+00> : vector<8x8xf32>
    %39 = tpu.matmul %37, %38, %cst_19 {dimension_numbers = #tpu.dot_dimension_numbers<[1], [1], [0], [0], [0, 0, 1, 0], [], []>} : vector<8x128xbf16>, vector<8x128xbf16>, vector<8x8xf32> -> vector<8x8xf32>
    %40 = vector.broadcast %32 : vector<8x1xf32> to vector<8x8xf32>
    %41 = arith.mulf %39, %40 : vector<8x8xf32>
    %cst_20 = arith.constant dense<0.000000e+00> : vector<8x8xf32>
    %42 = tpu.matmul %38, %37, %cst_20 {dimension_numbers = #tpu.dot_dimension_numbers<[1], [1], [0], [0], [0, 0, 1, 0], [], []>} : vector<8x128xbf16>, vector<8x128xbf16>, vector<8x8xf32> -> vector<8x8xf32>
    %43 = vector.broadcast %32 : vector<8x1xf32> to vector<8x8xf32>
    %44 = arith.mulf %42, %43 : vector<8x8xf32>
    %cst_21 = arith.constant dense<0xFF800000> : vector<8xf32>
    %45 = vector.multi_reduction <maximumf>, %41, %cst_21 [1] : vector<8x8xf32> to vector<8xf32>
    %46 = vector.shape_cast %45 : vector<8xf32> to vector<8x1xf32>
    %47 = vector.broadcast %46 : vector<8x1xf32> to vector<8x8xf32>
    %48 = arith.subf %41, %47 : vector<8x8xf32>
    %49 = math.exp %48 : vector<8x8xf32>
    %cst_22 = arith.constant dense<0.000000e+00> : vector<8xf32>
    %50 = vector.multi_reduction <add>, %49, %cst_22 [1] : vector<8x8xf32> to vector<8xf32>
    %51 = vector.shape_cast %50 : vector<8xf32> to vector<8x1xf32>
    %52 = math.log %51 : vector<8x1xf32>
    %53 = arith.addf %52, %46 : vector<8x1xf32>
    %cst_23 = arith.constant dense<0xFF800000> : vector<8xf32>
    %54 = vector.multi_reduction <maximumf>, %44, %cst_23 [1] : vector<8x8xf32> to vector<8xf32>
    %55 = vector.shape_cast %54 : vector<8xf32> to vector<8x1xf32>
    %56 = vector.broadcast %55 : vector<8x1xf32> to vector<8x8xf32>
    %57 = arith.subf %44, %56 : vector<8x8xf32>
    %58 = math.exp %57 : vector<8x8xf32>
    %cst_24 = arith.constant dense<0.000000e+00> : vector<8xf32>
    %59 = vector.multi_reduction <add>, %58, %cst_24 [1] : vector<8x8xf32> to vector<8xf32>
    %60 = vector.shape_cast %59 : vector<8xf32> to vector<8x1xf32>
    %61 = math.log %60 : vector<8x1xf32>
    %62 = arith.addf %61, %55 : vector<8x1xf32>
    %63 = arith.subf %53, %36 : vector<8x1xf32>
    %64 = vector.shape_cast %63 : vector<8x1xf32> to vector<1x8x1xf32>
    %cst_25 = arith.constant dense<0.000000e+00> : vector<1xf32>
    %65 = vector.multi_reduction <add>, %64, %cst_25 [1, 2] : vector<1x8x1xf32> to vector<1xf32>
    %66 = vector.shape_cast %65 : vector<1xf32> to vector<1x1x1xf32>
    %67 = vector.extract %66[0, 0, 0] : f32 from vector<1x1x1xf32>
    %cst_26 = arith.constant 8.000000e+00 : f32
    %68 = arith.divf %67, %cst_26 : f32
    %69 = arith.subf %62, %36 : vector<8x1xf32>
    %70 = vector.shape_cast %69 : vector<8x1xf32> to vector<1x8x1xf32>
    %cst_27 = arith.constant dense<0.000000e+00> : vector<1xf32>
    %71 = vector.multi_reduction <add>, %70, %cst_27 [1, 2] : vector<1x8x1xf32> to vector<1xf32>
    %72 = vector.shape_cast %71 : vector<1xf32> to vector<1x1x1xf32>
    %73 = vector.extract %72[0, 0, 0] : f32 from vector<1x1x1xf32>
    %cst_28 = arith.constant 8.000000e+00 : f32
    %74 = arith.divf %73, %cst_28 : f32
    %75 = arith.addf %68, %74 : f32
    %cst_29 = arith.constant 5.000000e-01 : f32
    %76 = arith.mulf %cst_29, %75 : f32
    %c0_30 = arith.constant 0 : index
    %c0_31 = arith.constant 0 : index
    %77 = memref.load %arg7[%c0_30, %c0_31] : memref<1x1xf32, #tpu.memory_space<smem>>
    memref.store %76, %arg7[%c0_30, %c0_31] : memref<1x1xf32, #tpu.memory_space<smem>>
    return
  }
}

</mosaic_0001>

<bundles_post_ra>
// kernel: clip_forward.1
= control target key start
LH: loop header
LB: loop body
LE: loop exit
PB: predicated region body
PF: predicated region fallthrough
CT: control target
= control target key end

     0   :  { %vm1372_vm0 = vmmov 0   ;;  %s1677_s0 = inlined_call_operand.vmem [shape: bf16[8,1024], index: 0, kind: input, shape index: {}]   ;;  %s1678_s1 = inlined_call_operand.vmem [shape: bf16[1024,128], index: 1, kind: input, shape index: {}]   ;;  %s1679_s2 = inlined_call_operand.vmem [shape: f32[1,128], index: 2, kind: input, shape index: {}]   ;;  %s1680_s3 = inlined_call_operand.vmem [shape: bf16[8,128], index: 3, kind: input, shape index: {}]   ;;  %s1681_s4 = inlined_call_operand.vmem [shape: bf16[128,128], index: 4, kind: input, shape index: {}]   ;;  %s1682_s5 = inlined_call_operand.vmem [shape: f32[1,128], index: 5, kind: input, shape index: {}]   ;;  %s1683_s6 = inlined_call_operand.<no memory space> [shape: f32[1,1], index: 6, kind: input, shape index: {}]   ;;  %s1684_s7 = inlined_call_operand.hbm [shape: f32[1,1], index: 7, kind: output, shape index: {}]  }
   0x1   :  { %v1263_v0 = vld [vmem:[%s1678_s1 + $0x78] sm:$0xff]   ;;  %v1267_v4 = vld [vmem:[%s1678_s1 + $0x70] sm:$0xff]   ;;  %v1271_v8 = vld [vmem:[%s1678_s1 + $0x68] sm:$0xff]  }
   0x2   :  { %v1264_v1 = vld [vmem:[%s1678_s1 + $0x38] sm:$0xff]   ;;  %1123 = vmatprep.subr.bf16.mxu0 %v1263_v0  ;;  %v1268_v5 = vld [vmem:[%s1678_s1 + $0x30] sm:$0xff]   ;;  %v1272_v9 = vld [vmem:[%s1678_s1 + $0x28] sm:$0xff]  }
   0x3   :  { %v1265_v2 = vld [vmem:[%s1678_s1 + $0xf8] sm:$0xff]   ;;  %1124 = vmatpush3.bf16.msra.mxu0 %v1264_v1  ;;  %v1269_v6 = vld [vmem:[%s1678_s1 + $0xf0] sm:$0xff]   ;;  %v1273_v10 = vld [vmem:[%s1678_s1 + $0xe8] sm:$0xff]  }
   0x4   :  { %v1266_v3 = vld [vmem:[%s1678_s1 + $0xb8] sm:$0xff]   ;;  %1145 = vmatprep.subr.bf16.mxu1 %v1265_v2  ;;  %1125 = vmatprep.subr.bf16.mxu0 %v1267_v4  ;;  %v1270_v7 = vld [vmem:[%s1678_s1 + $0xb0] sm:$0xff]   ;;  %v1274_v11 = vld [vmem:[%s1678_s1 + $0xa8] sm:$0xff]  }
   0x5   :  { %1146 = vmatpush3.bf16.msra.mxu1 %v1266_v3  ;;  %v1275_v12 = vld [vmem:[%s1678_s1 + $0x60] sm:$0xff]   ;;  %v1279_v16 = vld [vmem:[%s1678_s1 + $0x58] sm:$0xff]   ;;  %v1283_v20 = vld [vmem:[%s1678_s1 + $0x50] sm:$0xff]  }
   0x6   :  { %1147 = vmatprep.subr.bf16.mxu1 %v1269_v6  ;;  %v1276_v13 = vld [vmem:[%s1678_s1 + $0x20] sm:$0xff]   ;;  %v1280_v17 = vld [vmem:[%s1678_s1 + $0x18] sm:$0xff]   ;;  %v1284_v21 = vld [vmem:[%s1678_s1 + $0x10] sm:$0xff]  }
   0x7   :  { %1126 = vmatpush3.bf16.msra.mxu0 %v1268_v5  ;;  %v1277_v14 = vld [vmem:[%s1678_s1 + $0xe0] sm:$0xff]   ;;  %v1281_v18 = vld [vmem:[%s1678_s1 + $0xd8] sm:$0xff]   ;;  %v1285_v22 = vld [vmem:[%s1678_s1 + $0xd0] sm:$0xff]  }
   0x8   :  { %1127 = vmatprep.subr.bf16.mxu0 %v1271_v8  ;;  %v1278_v15 = vld [vmem:[%s1678_s1 + $0xa0] sm:$0xff]   ;;  %v1282_v19 = vld [vmem:[%s1678_s1 + $0x98] sm:$0xff]   ;;  %v1286_v23 = vld [vmem:[%s1678_s1 + $0x90] sm:$0xff]  }
   0x9   :  { %1148 = vmatpush3.bf16.msra.mxu1 %v1270_v7  ;;  %v1287_v24 = vld [vmem:[%s1678_s1 + $0x48] sm:$0xff]   ;;  %v1291_v28 = vld [vmem:[%s1678_s1 + $0x40] sm:$0xff]   ;;  %v1297_v35 = vld [vmem:[%s1678_s1 + $0x178] sm:$0xff]  }
   0xa   :  { %1149 = vmatprep.subr.bf16.mxu1 %v1273_v10  ;;  %v1288_v25 = vld [vmem:[%s1678_s1 + $0x8] sm:$0xff]   ;;  %v1292_v29 = vld [vmem:[%s1678_s1] sm:$0xff]   ;;  %v1300_v39 = vld [vmem:[%s1678_s1 + $0x138] sm:$0xff]  }
   0xb   :  { %1128 = vmatpush3.bf16.msra.mxu0 %v1272_v9  ;;  %v1289_v26 = vld [vmem:[%s1678_s1 + $0xc8] sm:$0xff]   ;;  %v1293_v30 = vld [vmem:[%s1678_s1 + $0xc0] sm:$0xff]   ;;  %v1301_v40 = vld [vmem:[%s1678_s1 + $0x1f8] sm:$0xff]   ;;  %v1371_v9 = vmov 0.0  }
   0xc   :  { %1129 = vmatprep.subr.bf16.mxu0 %v1275_v12  ;;  %v1290_v27 = vld [vmem:[%s1678_s1 + $0x88] sm:$0xff]   ;;  %v29_v31 = vld [vmem:[%s1677_s0] sm:$0xff]  ;;  %v1302_v41 = vld [vmem:[%s1678_s1 + $0x1b8] sm:$0xff]  }
   0xd   :  { %1150 = vmatpush3.bf16.msra.mxu1 %v1274_v11  ;;  %v1042_v32 = vcombine.low %v29_v31, %v29_v31  ;;  %v1043_v33 = vcombine.high %v29_v31, %v29_v31  ;;  %v1296_v34 = vld [vmem:[%s1678_s1 + $0x80] sm:$0xff]   ;;  %v30_v36 = vld [vmem:[%s1677_s0 + $0x8] sm:$0xff]  ;;  %v1303_v42 = vld [vmem:[%s1678_s1 + $0x170] sm:$0xff]  }
   0xe   :  { %1151 = vmatprep.subr.bf16.mxu1 %v1277_v14  ;;  %v1044_v37 = vcombine.low %v30_v36, %v30_v36  ;;  %v1045_v38 = vcombine.high %v30_v36, %v30_v36  ;;  %v1304_v43 = vld [vmem:[%s1678_s1 + $0x130] sm:$0xff]   ;;  %v1307_v46 = vld [vmem:[%s1678_s1 + $0x168] sm:$0xff]   ;;  %v1311_v50 = vld [vmem:[%s1678_s1 + $0x160] sm:$0xff]  }
   0xf   :  { %1130 = vmatpush3.bf16.msra.mxu0 %v1276_v13  ;;  %612 = vmatprep.mubr.bf16.mxu0 %v1043_v33  ;;  %v1305_v44 = vld [vmem:[%s1678_s1 + $0x1f0] sm:$0xff]   ;;  %v1308_v47 = vld [vmem:[%s1678_s1 + $0x128] sm:$0xff]   ;;  %v1312_v51 = vld [vmem:[%s1678_s1 + $0x120] sm:$0xff]  }
  0x10   :  { %1131 = vmatprep.subr.bf16.mxu0 %v1279_v16  ;;  %652 = vmatprep.mubr.bf16.mxu1 %v1045_v38  ;;  %v1306_v45 = vld [vmem:[%s1678_s1 + $0x1b0] sm:$0xff]   ;;  %v1309_v48 = vld [vmem:[%s1678_s1 + $0x1e8] sm:$0xff]   ;;  %v1313_v52 = vld [vmem:[%s1678_s1 + $0x1e0] sm:$0xff]  }
  0x11   :  { %1152 = vmatpush3.bf16.msra.mxu1 %v1278_v15  ;;  %v1310_v49 = vld [vmem:[%s1678_s1 + $0x1a8] sm:$0xff]   ;;  %v1314_v53 = vld [vmem:[%s1678_s1 + $0x1a0] sm:$0xff]   ;;  %v1315_v54 = vld [vmem:[%s1678_s1 + $0x158] sm:$0xff]  }
  0x12   :  { %1153 = vmatprep.subr.bf16.mxu1 %v1281_v18  ;;  %v1316_v55 = vld [vmem:[%s1678_s1 + $0x118] sm:$0xff]   ;;  %v1319_v58 = vld [vmem:[%s1678_s1 + $0x150] sm:$0xff]   ;;  %v1323_v62 = vld [vmem:[%s1678_s1 + $0x148] sm:$0xff]  }
  0x13   :  { %1132 = vmatpush3.bf16.msra.mxu0 %v1280_v17  ;;  %v1317_v56 = vld [vmem:[%s1678_s1 + $0x1d8] sm:$0xff]   ;;  %v1320_v59 = vld [vmem:[%s1678_s1 + $0x110] sm:$0xff]   ;;  %v1324_v63 = vld [vmem:[%s1678_s1 + $0x108] sm:$0xff]  }
  0x14   :  { %1133 = vmatprep.subr.bf16.mxu0 %v1283_v20  ;;  %v1318_v57 = vld [vmem:[%s1678_s1 + $0x198] sm:$0xff]   ;;  %v1321_v60 = vld [vmem:[%s1678_s1 + $0x1d0] sm:$0xff]   ;;  %v1325_v0 = vld [vmem:[%s1678_s1 + $0x1c8] sm:$0xff]  }
  0x15   :  { %1154 = vmatpush3.bf16.msra.mxu1 %v1282_v19  ;;  %v1322_v61 = vld [vmem:[%s1678_s1 + $0x190] sm:$0xff]   ;;  %v1326_v1 = vld [vmem:[%s1678_s1 + $0x188] sm:$0xff]   ;;  %v1327_v2 = vld [vmem:[%s1678_s1 + $0x140] sm:$0xff]  }
  0x16   :  { %1155 = vmatprep.subr.bf16.mxu1 %v1285_v22  ;;  %v1328_v3 = vld [vmem:[%s1678_s1 + $0x100] sm:$0xff]   ;;  %v31_v5 = vld [vmem:[%s1677_s0 + $0x10] sm:$0xff]  ;;  %v32_v10 = vld [vmem:[%s1677_s0 + $0x18] sm:$0xff] }
  0x17   :  { %1134 = vmatpush3.bf16.msra.mxu0 %v1284_v21  ;;  %v1329_v4 = vld [vmem:[%s1678_s1 + $0x1c0] sm:$0xff]   ;;  %v1046_v6 = vcombine.low %v31_v5, %v31_v5  ;;  %v1047_v7 = vcombine.high %v31_v5, %v31_v5  ;;  %v1048_v11 = vcombine.low %v32_v10, %v32_v10  ;;  %v1049_v12 = vcombine.high %v32_v10, %v32_v10  ;;  %v1335_v13 = vld [vmem:[%s1681_s4 + $0x38] sm:$0xff]   ;;  %v1336_v14 = vld [vmem:[%s1681_s4 + $0x30] sm:$0xff]  }
  0x18   :  { %1135 = vmatprep.subr.bf16.mxu0 %v1287_v24  ;;  %v1332_v8 = vld [vmem:[%s1678_s1 + $0x180] sm:$0xff]   ;;  %v1337_v15 = vld [vmem:[%s1681_s4 + $0x28] sm:$0xff]  }
  0x19   :  { %1156 = vmatpush3.bf16.msra.mxu1 %v1286_v23 }
  0x1a   :  { %1157 = vmatprep.subr.bf16.mxu1 %v1289_v26 }
  0x1b   :  { %1136 = vmatpush3.bf16.msra.mxu0 %v1288_v25 }
  0x1c   :  { %1137 = vmatprep.subr.bf16.mxu0 %v1291_v28 }
  0x1d   :  { %1158 = vmatpush3.bf16.msra.mxu1 %v1290_v27 }
  0x1e   :  { %1159 = vmatprep.subr.bf16.mxu1 %v1293_v30 }
  0x1f   :  { %1138 = vmatpush3.bf16.msra.mxu0 %v1292_v29 }
  0x20   :  { %1167 = vmatprep.subr.bf16.mxu0 %v1297_v35 }
  0x21   :  { %1160 = vmatpush3.bf16.msra.mxu1 %v1296_v34 }
  0x22   :  { %613 = vmatmul.mubr.bf16.vlgmr.msra.gmra.mxu0 %v1042_v32  ;;  %1189 = vmatprep.subr.bf16.mxu1 %v1301_v40 }
  0x23   :  { %1168 = vmatpush3.bf16.msra.mxu0 %v1300_v39  ;;  %692 = vmatprep.mubr.bf16.mxu0 %v1047_v7 }
  0x24   :  { %653 = vmatmul.mubr.bf16.vlgmr.msra.gmra.mxu1 %v1044_v37  ;;  %1169 = vmatprep.subr.bf16.mxu0 %v1303_v42 }
  0x25   :  { %1190 = vmatpush3.bf16.msra.mxu1 %v1302_v41  ;;  %732 = vmatprep.mubr.bf16.mxu1 %v1049_v12 }
  0x26   :  { %1191 = vmatprep.subr.bf16.mxu1 %v1305_v44 }
  0x27   :  { %1170 = vmatpush3.bf16.msra.mxu0 %v1304_v43 }
  0x28   :  { %1171 = vmatprep.subr.bf16.mxu0 %v1307_v46 }
  0x29   :  { %1192 = vmatpush3.bf16.msra.mxu1 %v1306_v45 }
  0x2a   :  { %1193 = vmatprep.subr.bf16.mxu1 %v1309_v48 }
  0x2b   :  { %1172 = vmatpush3.bf16.msra.mxu0 %v1308_v47 }
  0x2c   :  { %1173 = vmatprep.subr.bf16.mxu0 %v1311_v50 }
  0x2d   :  { %1194 = vmatpush3.bf16.msra.mxu1 %v1310_v49 }
  0x2e   :  { %1195 = vmatprep.subr.bf16.mxu1 %v1313_v52 }
  0x2f   :  { %1174 = vmatpush3.bf16.msra.mxu0 %v1312_v51 }
  0x30   :  { %1175 = vmatprep.subr.bf16.mxu0 %v1315_v54 }
  0x31   :  { %1196 = vmatpush3.bf16.msra.mxu1 %v1314_v53 }
  0x32   :  { %1197 = vmatprep.subr.bf16.mxu1 %v1317_v56 }
  0x33   :  { %1176 = vmatpush3.bf16.msra.mxu0 %v1316_v55 }
  0x34   :  { %1177 = vmatprep.subr.bf16.mxu0 %v1319_v58 }
  0x35   :  { %1198 = vmatpush3.bf16.msra.mxu1 %v1318_v57 }
  0x36   :  { %1199 = vmatprep.subr.bf16.mxu1 %v1321_v60 }
  0x37   :  { %1178 = vmatpush3.bf16.msra.mxu0 %v1320_v59 }
  0x38   :  { %1179 = vmatprep.subr.bf16.mxu0 %v1323_v62 }
  0x39   :  { %1200 = vmatpush3.bf16.msra.mxu1 %v1322_v61 }
  0x3a   :  { %1201 = vmatprep.subr.bf16.mxu1 %v1325_v0 }
  0x3b   :  { %1180 = vmatpush3.bf16.msra.mxu0 %v1324_v63 }
  0x3c   :  { %1181 = vmatprep.subr.bf16.mxu0 %v1327_v2 }
  0x3d   :  { %1202 = vmatpush3.bf16.msra.mxu1 %v1326_v1 }
  0x3e   :  { %1203 = vmatprep.subr.bf16.mxu1 %v1329_v4 }
  0x3f   :  { %1182 = vmatpush3.bf16.msra.mxu0 %v1328_v3 }
  0x40   :  { %1224 = vmatprep.subr.bf16.mxu0 %v1371_v9 }
  0x41   :  { %1204 = vmatpush3.bf16.msra.mxu1 %v1332_v8 }
  0x42   :  { %693 = vmatmul.mubr.bf16.vlgmr.msra.gmra.mxu0 %v1046_v6  ;;  %1244 = vmatprep.subr.bf16.mxu1 %v1371_v9 }
  0x43   :  { %1225 = vmatpush3.bf16.msra.mxu0 %v1335_v13  ;;  %1240 = vmatprep.mubr.msk.bf16.mxu0 %vm1372_vm0, %v1371_v9 }
  0x44   :  { %733 = vmatmul.mubr.bf16.vlgmr.msra.gmra.mxu1 %v1048_v11  ;;  %1226 = vmatprep.subr.bf16.mxu0 %v1371_v9 }
  0x45   :  { %1246 = vmatprep.mubr.msk.bf16.mxu1 %vm1372_vm0, %v1371_v9 }
  0x47   :  { %1227 = vmatpush3.bf16.msra.mxu0 %v1336_v14 }
  0x48   :  { %1228 = vmatprep.subr.bf16.mxu0 %v1371_v9 }
  0x49   :  { %13 = vsyncpa [#allocation4], 0  ;;  %v1338_v16 = vld [vmem:[%s1681_s4 + $0x20] sm:$0xff]   ;;  %v1339_v17 = vld [vmem:[%s1681_s4 + $0x18] sm:$0xff]   ;;  %v879_v13 = vstv %s1683_s6  ;;  %vm970_vm5 = vcmask 64512   ;;  %vm996_vm6 = vcmask 7168  }
  0x4a   :  { %v1340_v18 = vld [vmem:[%s1681_s4 + $0x10] sm:$0xff]   ;;  %v1341_v19 = vld [vmem:[%s1681_s4 + $0x8] sm:$0xff]   ;;  %v1342_v20 = vld [vmem:[%s1681_s4] sm:$0xff]   ;;  %v880_v14 = vmul.f32 1.442695, %v879_v13  ;;  %s1373_s22 = smov [#allocation3]  }
  0x4b   :  { %1229 = vmatpush3.bf16.msra.mxu0 %v1337_v15  ;;  %v740_v21 = vld [vmem:[%s1680_s3] sm:$0xf] }
  0x4c   :  { %1230 = vmatprep.subr.bf16.mxu0 %v1371_v9  ;;  %v1041_v39 = vld [vmem:[%s1679_s2] ss:$0 sm:$0xff] }
  0x4d   :  { %v1114_v44 = vld [vmem:[%s1682_s5] ss:$0 sm:$0xff] }
  0x4f   :  { %1231 = vmatpush3.bf16.msra.mxu0 %v1338_v16 }
  0x50   :  { %1232 = vmatprep.subr.bf16.mxu0 %v1371_v9 }
  0x53   :  { %1233 = vmatpush3.bf16.msra.mxu0 %v1339_v17 }
  0x54   :  { %1234 = vmatprep.subr.bf16.mxu0 %v1371_v9 }
  0x57   :  { %1235 = vmatpush3.bf16.msra.mxu0 %v1340_v18 }
  0x58   :  { %1236 = vmatprep.subr.bf16.mxu0 %v1371_v9 }
  0x5b   :  { %1237 = vmatpush3.bf16.msra.mxu0 %v1341_v19 }
  0x5c   :  { %1238 = vmatprep.subr.bf16.mxu0 %v1371_v9 }
  0x5f   :  { %1239 = vmatpush3.bf16.msra.mxu0 %v1342_v20 }
  0x62   :  { %1241 = vmatmul.mubr.bf16.vlgmr.msra.gmra.mxu0 %v740_v21 }
  0xe2   :  { %v1139_v22 = vpop.f32.mrf.mxu0 }
  0xe4   :  { %v1140_v23 = vpop.f32.mrf.mxu0  ;;  %v1161_v24 = vpop.f32.mrf.mxu1 }
  0xe5   :  { %v1141_v38 = vadd.f32 %v1140_v23, %v1139_v22 }
  0xe6   :  { %v1142_v25 = vpop.f32.mrf.mxu0  ;;  %v1162_v26 = vpop.f32.mrf.mxu1 }
  0xe7   :  { %v615_v40 = vadd.f32 %v1141_v38, %v1041_v39  ;;  %v1163_v41 = vadd.f32 %v1162_v26, %v1161_v24 }
  0xe8   :  { %v1143_v27 = vpop.f32.mrf.mxu0  ;;  %v1164_v28 = vpop.f32.mrf.mxu1 }
  0xe9   :  { %v655_v43 = vadd.f32 %v1163_v41, %v615_v40 }
  0xea   :  { %v1165_v29 = vpop.f32.mrf.mxu1 }
 0x102   :  { %v1183_v30 = vpop.f32.mrf.mxu0 }
 0x104   :  { %v1184_v31 = vpop.f32.mrf.mxu0  ;;  %v1205_v32 = vpop.f32.mrf.mxu1 }
 0x105   :  { %v1185_v42 = vadd.f32 %v1184_v31, %v1183_v30 }
 0x106   :  { %v1186_v33 = vpop.f32.mrf.mxu0  ;;  %v1206_v34 = vpop.f32.mrf.mxu1 }
 0x107   :  { %v695_v45 = vadd.f32 %v1185_v42, %v655_v43  ;;  %v1207_v46 = vadd.f32 %v1206_v34, %v1205_v32 }
 0x108   :  { %v1187_v35 = vpop.f32.mrf.mxu0  ;;  %v1208_v36 = vpop.f32.mrf.mxu1 }
 0x109   :  { %v735_v50 = vadd.f32 %v1207_v46, %v695_v45 }
 0x10a   :  { %v1209_v37 = vpop.f32.mrf.mxu1 }
 0x10b   :  { %v852_v54 = vmul.f32 %v735_v50, %v735_v50 }
 0x122   :  { %v846_v47 = vpop.f32.mrf.mxu0 }
 0x123   :  { %v847_v48 = vadd.f32 %v1114_v44, %v846_v47 }
 0x124   :  { %v1242_v49 = vpop.f32.mrf.mxu0 }
 0x125   :  { %v864_v51 = vmul.f32 %v847_v48, %v847_v48 }
 0x126   :  { %v849_v52 = vpop.f32.mrf.mxu0 }
 0x127   :  { %865 = vadd.xlane.f32.xlu0 %v864_v51 }
 0x128   :  { %v1243_v53 = vpop.f32.mrf.mxu0 }
 0x12b   :  { %853 = vadd.xlane.f32.xlu0 %v852_v54 }
 0x1b0   :  { %v866_v55 = vpop.xlane.xlu0 %865 }
 0x1b1   :  { %1343 = vrsqrt.f32 %v866_v55  ;;  %vm869_vm1 = vcmp.eq.f32.partialorder %v866_v55, inf  ;;  %v872_v59 = vand.u32 2147483648, %v866_v55  ;;  %vm871_vm2 = vcmp.eq.f32.partialorder %v866_v55, 0.0 }
 0x1b4   :  { %v854_v56 = vpop.xlane.xlu0 %853 }
 0x1b5   :  { %1345 = vrsqrt.f32 %v854_v56  ;;  %vm857_vm3 = vcmp.eq.f32.partialorder %v854_v56, inf  ;;  %v860_v1 = vand.u32 2147483648, %v854_v56  ;;  %vm859_vm4 = vcmp.eq.f32.partialorder %v854_v56, 0.0 }
 0x1be   :  { %v1344_v57 = vpop.eup %1343 }
 0x1bf   :  { %v868_v58 = vmul.f32 %v1344_v57, %v866_v55 }
 0x1c1   :  { %v870_v60 = vsel %vm869_vm1, %v866_v55, %v868_v58 }
 0x1c2   :  { %v1346_v61 = vpop.eup %1345  ;;  %v873_v62 = vsel %vm871_vm2, %v872_v59, %v870_v60 }
 0x1c3   :  { %v874_v63 = vadd.f32 1e-06, %v873_v62  ;;  %v856_v0 = vmul.f32 %v1346_v61, %v854_v56 }
 0x1c5   :  { %1347 = vrcp.f32 %v874_v63  ;;  %v858_v2 = vsel %vm857_vm3, %v854_v56, %v856_v0 }
 0x1c6   :  { %v861_v3 = vsel %vm859_vm4, %v860_v1, %v858_v2 }
 0x1c7   :  { %v862_v4 = vadd.f32 1e-06, %v861_v3 }
 0x1c9   :  { %1349 = vrcp.f32 %v862_v4 }
 0x1ca   :  { %1351 = vpow2.f32 %v880_v14 }
 0x1d2   :  { %v1348_v5 = vpop.eup %1347 }
 0x1d3   :  { %v877_v6 = vmul.f32 %v1348_v5, %v847_v48 }
 0x1d5   :  { %v887_v7 = vpack.c.bf16 %v877_v6, %v877_v6 }
 0x1d6   :  { %v1350_v8 = vpop.eup %1349 }
 0x1d7   :  { %1245 = vmatpush3.bf16.xpose.msra.mxu1 %v887_v7  ;;  %v876_v10 = vmul.f32 %v1350_v8, %v735_v50  ;;  %v1352_v15 = vpop.eup %1351 }
 0x1d8   :  { %1250 = vmatprep.subr.bf16.mxu1 %v1371_v9 }
 0x1d9   :  { %v882_v11 = vmul.f32 %v877_v6, %v876_v10  ;;  %v886_v12 = vpack.c.bf16 %v876_v10, %v876_v10 }
 0x1de   :  { %1247 = vmatmul.mubr.bf16.vlgmr.msra.gmra.mxu1 %v886_v12 }
 0x1df   :  { %1251 = vmatpush3.bf16.xpose.msra.mxu1 %v886_v12  ;;  %1252 = vmatprep.mubr.msk.bf16.mxu1 %vm1372_vm0, %v1371_v9 }
 0x1e6   :  { %1253 = vmatmul.mubr.bf16.vlgmr.msra.gmra.mxu1 %v887_v7 }
 0x29e   :  { %v922_v16 = vpop.f32.mrf.mxu1 }
 0x29f   :  { %v928_v17 = vmul.f32 %v1352_v15, %v922_v16 }
 0x2a0   :  { %v1248_v18 = vpop.f32.mrf.mxu1 }
 0x2a1   :  { %v971_v19 = vsel %vm970_vm5, %v928_v17, -inf }
 0x2a2   :  { %972 = vmax.xlane.f32.xlu1 %v971_v19  ;;  %v925_v20 = vpop.f32.mrf.mxu1 }
 0x2a4   :  { %v1249_v21 = vpop.f32.mrf.mxu1 }
 0x2a6   :  { %v963_v22 = vpop.f32.mrf.mxu1 }
 0x2a7   :  { %v969_v23 = vmul.f32 %v1352_v15, %v963_v22 }
 0x2a8   :  { %v1254_v9 = vpop.f32.mrf.mxu1 }
 0x2a9   :  { %v983_v24 = vsel %vm970_vm5, %v969_v23, -inf }
 0x2aa   :  { %984 = vmax.xlane.f32.xlu1 %v983_v24  ;;  %v966_v25 = vpop.f32.mrf.mxu1 }
 0x2ac   :  { %v1255_v26 = vpop.f32.mrf.mxu1 }
 0x32b   :  { %v973_v27 = vpop.xlane.xlu1 %972 }
 0x32c   :  { %v974_v28 = vsub.f32 %v928_v17, %v973_v27 }
 0x32e   :  { %v975_v29 = vmul.f32 1.442695, %v974_v28 }
 0x330   :  { %1353 = vpow2.f32 %v975_v29 }
 0x333   :  { %v985_v30 = vpop.xlane.xlu1 %984 }
 0x334   :  { %v986_v31 = vsub.f32 %v969_v23, %v985_v30 }
 0x336   :  { %v987_v32 = vmul.f32 1.442695, %v986_v31 }
 0x338   :  { %1355 = vpow2.f32 %v987_v32 }
 0x33d   :  { %v1354_v33 = vpop.eup %1353 }
 0x33e   :  { %v977_v34 = vsel %vm970_vm5, %v1354_v33, 0.0 }
 0x33f   :  { %978 = vadd.xlane.f32.xlu0 %v977_v34 }
 0x343   :  { %883 = vadd.xlane.f32.xlu0 %v882_v11 }
 0x345   :  { %v1356_v35 = vpop.eup %1355 }
 0x346   :  { %v989_v36 = vsel %vm970_vm5, %v1356_v35, 0.0 }
 0x347   :  { %990 = vadd.xlane.f32.xlu1 %v989_v36 }
 0x3c8   :  { %v979_v37 = vpop.xlane.xlu0 %978 }
 0x3c9   :  { %1357 = vlog2.f32 %v979_v37 }
 0x3cc   :  { %v884_v40 = vpop.xlane.xlu0 %883 }
 0x3cd   :  { %v885_v42 = vmul.f32 %v1352_v15, %v884_v40 }
 0x3d0   :  { %v991_v38 = vpop.xlane.xlu1 %990 }
 0x3d1   :  { %1359 = vlog2.f32 %v991_v38 }
 0x3d6   :  { %v1358_v39 = vpop.eup %1357 }
 0x3d7   :  { %v981_v41 = vmul.f32 0.6931472, %v1358_v39 }
 0x3d9   :  { %v982_v43 = vadd.f32 %v981_v41, %v973_v27 }
 0x3db   :  { %v995_v44 = vsub.f32 %v982_v43, %v885_v42 }
 0x3dd   :  { %v997_v45 = vsel %vm996_vm6, %v995_v44, 0.0 }
 0x3de   :  { %v1360_v46 = vpop.eup %1359  ;;  %998 = vadd.xlane.f32.xlu1 %v997_v45 }
 0x3df   :  { %v993_v47 = vmul.f32 0.6931472, %v1360_v46 }
 0x3e1   :  { %v994_v48 = vadd.f32 %v993_v47, %v985_v30 }
 0x3e3   :  { %v1010_v49 = vsub.f32 %v994_v48, %v885_v42 }
 0x3e5   :  { %v1011_v50 = vsel %vm996_vm6, %v1010_v49, 0.0 }
 0x3e6   :  { %1012 = vadd.xlane.f32.xlu0 %v1011_v50 }
 0x467   :  { %v999_v51 = vpop.xlane.xlu1 %998 }
 0x468   :  { %v1000_v52 = vrot.slane %v999_v51, 4 }
 0x46a   :  { %v1001_v53 = vadd.f32 %v1000_v52, %v999_v51 }
 0x46c   :  { %v1002_v54 = vrot.slane %v1001_v53, 2 }
 0x46e   :  { %v1003_v55 = vadd.f32 %v1002_v54, %v1001_v53 }
 0x46f   :  { %v1013_v56 = vpop.xlane.xlu0 %1012 }
 0x470   :  { %v1014_v57 = vrot.slane %v1013_v56, 4  ;;  %v1004_v58 = vrot.slane %v1003_v55, 1 }
 0x472   :  { %v1015_v59 = vadd.f32 %v1014_v57, %v1013_v56  ;;  %v1005_v60 = vadd.f32 %v1004_v58, %v1003_v55 }
 0x474   :  { %v1016_v61 = vrot.slane %v1015_v59, 2  ;;  %1256 = vpush %v1005_v60 }
 0x476   :  { %v1017_v62 = vadd.f32 %v1016_v61, %v1015_v59 }
 0x478   :  { %v1018_v63 = vrot.slane %v1017_v62, 1 }
 0x47a   :  { %v1019_v0 = vadd.f32 %v1018_v63, %v1017_v62 }
 0x47c   :  { %1258 = vpush %v1019_v0 }
 0x4a5   :  { %s1257_s6 = spop %1256 }
 0x4a6   :  { %s1009_s17 = smul.f32 0.125, %s1257_s6 }
 0x4ad   :  { %s1259_s18 = spop %1258 }
 0x4ae   :  { %s1023_s19 = smul.f32 0.125, %s1259_s18 }
 0x4b0   :  { %s1024_s20 = sadd.f32 %s1023_s19, %s1009_s17 }
 0x4b2   :  { %s1025_s21 = smul.f32 0.5, %s1024_s20 }
 0x4b4   :  { %1027 = sst [smem:[#allocation3]] %s1025_s21 }
 0x4b5   :  { %1035 = dma.smem_to_hbm %s1373_s22, 16, %s1684_s7, [#allocation4]  }
 0x4b6   :  { %1369 = dma.done.wait [#allocation4], 16  }
 0x4b7   :  { %1370 = vsyncadd [#allocation4], 4294967280 }
 0x4b8   :  { %1039 = sfence }
 0x4b9   :  { %1040 = vsyncpa [#allocation4], 1 }

</bundles_post_ra>
